<compile_context>
chip_gen: v7x
topology: tpu7x:2x2x1
jax: 0.10.0
libtpu: 0.0.40
codegen_flags: <defaults>
</compile_context>

<pallas_src>
import math

import jax
import jax.numpy as jnp
from jax.experimental import pallas as pl
from jax.experimental.pallas import tpu as pltpu


_MAX_LANES = 2048   # lane width of the flat 2-D view (multiple of 128)
_MAX_CHUNKS = 8     # max number of concurrent HBM->HBM DMAs


def _pick_lanes(total):
    """Largest multiple of 128 (<= _MAX_LANES) that divides `total`; 0 if none."""
    lanes = 0
    for cand in range(128, _MAX_LANES + 1, 128):
        if total % cand == 0:
            lanes = cand
    return lanes


def _row_chunks(rows, itemsize):
    """Static (start, size) chunks of the row axis, sublane-aligned boundaries."""
    packing = max(1, 4 // itemsize)   # elements per 32-bit word
    align = 8 * packing               # 8 (f32), 16 (bf16), 32 (int8/fp8) rows
    n = min(_MAX_CHUNKS, max(1, rows // align))
    base = (rows // n // align) * align
    chunks = []
    start = 0
    for i in range(n):
        size = base if i < n - 1 else rows - start
        if size > 0:
            chunks.append((start, size))
        start += size
    if not chunks:                    # rows smaller than one aligned chunk
        chunks = [(0, rows)]
    return chunks


def _make_copy_kernel(chunks):
    """HBM->HBM chunked DMA copy kernel over static row chunks."""

    def kernel(x_hbm, o_hbm, sems):
        copies = []
        for idx, (start, size) in enumerate(chunks):
            cp = pltpu.make_async_copy(
                x_hbm.at[pl.ds(start, size), :],
                o_hbm.at[pl.ds(start, size), :],
                sems.at[idx],
            )
            cp.start()
            copies.append(cp)
        for cp in copies:
            cp.wait()

    return kernel


def unflatten(x, shape):
    """Pallas equivalent of PyTorch `x.view(-1, *shape)`."""
    shape = tuple(int(s) for s in shape)
    d = math.prod(shape)
    total = math.prod(x.shape)
    if total % d != 0:
        raise ValueError(
            f"input size {total} must be divisible by prod(shape)={d}")
    n_batch = total // d

    itemsize = jnp.dtype(x.dtype).itemsize
    lanes = _pick_lanes(total)
    if lanes == 0:
        # Total not divisible by 128: single whole-array HBM->HBM DMA.
        # No VMEM involved, so this never overflows scoped VMEM.
        rows, lanes = 1, total
    else:
        rows = total // lanes

    chunks = _row_chunks(rows, itemsize)

    # glue: metadata-only reshape to a lane-dense flat 2-D view.
    x_flat = jnp.reshape(x, (rows, lanes))

    out_flat = pl.pallas_call(
        _make_copy_kernel(chunks),
        out_shape=jax.ShapeDtypeStruct((rows, lanes), x.dtype),
        in_specs=[pl.BlockSpec(memory_space=pl.ANY)],
        out_specs=pl.BlockSpec(memory_space=pl.ANY),
        scratch_shapes=[pltpu.SemaphoreType.DMA((len(chunks),))],
        cost_estimate=pl.CostEstimate(
            flops=0,
            transcendentals=0,
            bytes_accessed=2 * total * itemsize,
        ),
    )(x_flat)

    # glue: free metadata reshape to (-1, *shape), matching torch .view.
    return jnp.reshape(out_flat, (n_batch,) + shape)


if __name__ == "__main__":
    key = jax.random.PRNGKey(0)

    # Unflatten target shape (C, H, W) = (4, 16, 16); batch = 2.
    target_shape = (4, 16, 16)
    batch = 2
    flat_dim = math.prod(target_shape)  # 1024

    # Input as it would come out of a dense layer: (batch, flat_dim).
    x = jax.random.normal(key, (batch, flat_dim), dtype=jnp.float32)

    # Reference (torch .view equivalent).
    expected = jax.block_until_ready(jnp.reshape(x, (-1,) + target_shape))

    out = unflatten(x, target_shape)
    out = jax.block_until_ready(out)

    assert out.shape == (batch,) + target_shape, out.shape
    assert out.dtype == expected.dtype
    assert bool(jnp.array_equal(out, expected))

    print("KERNEL_OK")
</pallas_src>

<mosaic_0001>
module attributes {stable_mosaic.version = 11 : i64} {
  func.func @kernel(%arg0: memref<1x2048xf32, #tpu.memory_space<any>>, %arg1: memref<1x2048xf32, #tpu.memory_space<any>>, %arg2: memref<1x!tpu.dma_semaphore, #tpu.memory_space<semaphore_mem>>) attributes {dimension_semantics = [], scalar_prefetch = 0 : i64, scratch_operands = 1 : i64, tpu.core_type = #tpu.core_type<tc>} {
    %c0_i32 = arith.constant 0 : i32
    %c0_i32_0 = arith.constant 0 : i32
    %c0_i32_1 = arith.constant 0 : i32
    %0 = tpu.memref_slice %arg0[%c0_i32_0, %c0_i32_1] : memref<1x2048xf32, #tpu.memory_space<any>> -> memref<1x2048xf32, #tpu.memory_space<any>>
    %c0_i32_2 = arith.constant 0 : i32
    %c0_i32_3 = arith.constant 0 : i32
    %1 = tpu.memref_slice %arg1[%c0_i32_2, %c0_i32_3] : memref<1x2048xf32, #tpu.memory_space<any>> -> memref<1x2048xf32, #tpu.memory_space<any>>
    %2 = tpu.memref_slice %arg2[%c0_i32] : memref<1x!tpu.dma_semaphore, #tpu.memory_space<semaphore_mem>> -> memref<1x!tpu.dma_semaphore, #tpu.memory_space<semaphore_mem>>
    %3 = tpu.memref_squeeze %2 : memref<1x!tpu.dma_semaphore, #tpu.memory_space<semaphore_mem>> -> memref<!tpu.dma_semaphore, #tpu.memory_space<semaphore_mem>>
    tpu.enqueue_dma source(%0 : memref<1x2048xf32, #tpu.memory_space<any>>) target(%1 : memref<1x2048xf32, #tpu.memory_space<any>>) target_semaphore(%3 : memref<!tpu.dma_semaphore, #tpu.memory_space<semaphore_mem>>)
    %c0_i32_4 = arith.constant 0 : i32
    %c0_i32_5 = arith.constant 0 : i32
    %c0_i32_6 = arith.constant 0 : i32
    %4 = tpu.memref_slice %arg0[%c0_i32_5, %c0_i32_6] : memref<1x2048xf32, #tpu.memory_space<any>> -> memref<1x2048xf32, #tpu.memory_space<any>>
    %c0_i32_7 = arith.constant 0 : i32
    %c0_i32_8 = arith.constant 0 : i32
    %5 = tpu.memref_slice %arg1[%c0_i32_7, %c0_i32_8] : memref<1x2048xf32, #tpu.memory_space<any>> -> memref<1x2048xf32, #tpu.memory_space<any>>
    %6 = tpu.memref_slice %arg2[%c0_i32_4] : memref<1x!tpu.dma_semaphore, #tpu.memory_space<semaphore_mem>> -> memref<1x!tpu.dma_semaphore, #tpu.memory_space<semaphore_mem>>
    %7 = tpu.memref_squeeze %6 : memref<1x!tpu.dma_semaphore, #tpu.memory_space<semaphore_mem>> -> memref<!tpu.dma_semaphore, #tpu.memory_space<semaphore_mem>>
    tpu.wait_dma2 semaphore(%7 : memref<!tpu.dma_semaphore, #tpu.memory_space<semaphore_mem>>) src(%4 : memref<1x2048xf32, #tpu.memory_space<any>>) dst(%5 : memref<1x2048xf32, #tpu.memory_space<any>>)
    return
  }
}

</mosaic_0001>

<bundles_post_ra>
// kernel: tpu_custom_call.1
= control target key start
LH: loop header
LB: loop body
LE: loop exit
PB: predicated region body
PF: predicated region fallthrough
CT: control target
= control target key end

     0   :  { %s34_s6 = smov [#allocation2]   ;;  %s35_s7 = smov [#allocation3]   ;;  %s53_s0 = inlined_call_operand.hbm [shape: f32[1,2048], index: 0, kind: input, shape index: {}]   ;;  %s54_s1 = inlined_call_operand.hbm [shape: f32[1,2048], index: 1, kind: output, shape index: {}]  }
   0x1   :  { %s36_s8 = smov 0  }
   0x2   :  { %18 = dma.general %s53_s0, 256, %s54_s1, %s34_s6, %s35_s7, [#allocation4], %s36_s8, 0  }
   0x3   :  { %32 = dma.done.wait [#allocation2], 256 }
   0x4   :  { %33 = vsyncadd [#allocation2], 4294967040 }
   0x5   :  { %22 = vsyncmov [#allocation2] }
   0x8   :  { %s23_s13 = vpop.sfrf %22 }
   0x9   :  { %p28_p0 = scmp.ne.s32.totalorder %s23_s13, 0 }
   0xb   :  { %27 = shalt.err (%p28_p0)  }

</bundles_post_ra>
